<compile_context>
chip_gen: v7x
topology: tpu7x:2x2x1
jax: 0.10.0
libtpu: 0.0.40
codegen_flags: <defaults>
</compile_context>

<pallas_src>
import functools

import jax
import jax.numpy as jnp
import numpy as np
from jax.experimental import pallas as pl
from jax.experimental.pallas import tpu as pltpu


def _round_up(a: int, b: int) -> int:
    return -(-a // b) * b


def _stft_kernel(slab_ref, basis_ref, out_ref, *, hop, r_sub, tile_f):
    """One (frame-tile, bins-tile) block of the windowed DFT.

    slab_ref : (tile_f + r_sub - 1, hop)  hop-chunks covering this frame tile
    basis_ref: (r_sub * hop, tile_bins)   window-folded [cos | -sin] basis
    out_ref  : (tile_f, tile_bins)        fused (real | imag) spectrogram tile
    """
    slab = slab_ref[...]                                   # (tile_f + R - 1, hop)
    for r in range(r_sub):
        # Frame f of this tile needs hop-chunks f..f+R-1  ->  shifted slice.
        lhs = slab[r:r + tile_f, :]                        # (tile_f, hop)
        rhs = basis_ref[pl.ds(r * hop, hop), :]            # (hop, tile_bins)
        contrib = jnp.dot(lhs, rhs, preferred_element_type=jnp.float32)
        if r == 0:
            out_ref[...] = contrib
        else:
            out_ref[...] += contrib


@functools.partial(jax.jit, static_argnames=("n_fft", "n_hop"))
def torch_stft_pallas(x, window, n_fft=4096, n_hop=1024):
    """x: (nb_samples, nb_channels, nb_timesteps) float32.

    Returns (nb_samples, nb_channels, nb_bins, nb_frames, 2) float32,
    matching TorchSTFT(center=False).forward.
    """
    nb_samples, nb_channels, nb_timesteps = x.shape
    n_bins = n_fft // 2 + 1
    n_frames = 1 + (nb_timesteps - n_fft) // n_hop
    N = nb_samples * nb_channels

    # Hop-chunk decomposition: n_fft is covered by R hops (zero-pad the basis
    # rows if n_fft is not a multiple of n_hop).
    R = -(-n_fft // n_hop)
    k_pad = R * n_hop

    # Tile sizes.
    tile_f = min(_round_up(n_frames, 8), 256)          # frames per MXU M-tile
    f_pad = _round_up(n_frames, tile_f)
    num_t = f_pad // tile_f
    two_bins = 2 * n_bins                              # fused real|imag columns
    tile_b = 256 if two_bins > 256 else _round_up(two_bins, 128)
    bins_pad = _round_up(two_bins, tile_b)
    num_b = bins_pad // tile_b
    slab_rows = tile_f + R - 1

    # --- glue: window-folded, fused, lane-padded DFT basis  (k_pad, bins_pad)
    n_idx = np.arange(n_fft)
    k_idx = np.arange(n_bins)
    ang = 2.0 * np.pi * np.outer(n_idx, k_idx) / n_fft
    cos_b = jnp.asarray(np.cos(ang), jnp.float32)      # (n_fft, n_bins)
    sin_b = jnp.asarray(np.sin(ang), jnp.float32)
    w = window.astype(jnp.float32)[:, None]
    core = jnp.concatenate([w * cos_b, -(w * sin_b)], axis=1)   # (n_fft, 2*n_bins)
    basis = jnp.zeros((k_pad, bins_pad), jnp.float32).at[:n_fft, :two_bins].set(core)

    # --- glue: de-duplicated hop-chunk slabs  (N, num_t, slab_rows, hop) ---
    # (only R-1 chunks of overlap per frame tile instead of duplicating every
    #  sample R times as a framed array)
    c_total = f_pad + R - 1
    x_flat = x.reshape(N, nb_timesteps).astype(jnp.float32)
    need = c_total * n_hop
    if need > nb_timesteps:
        x_flat = jnp.pad(x_flat, ((0, 0), (0, need - nb_timesteps)))
    elif need < nb_timesteps:
        x_flat = x_flat[:, :need]
    chunks = x_flat.reshape(N, c_total, n_hop)
    gidx = np.arange(num_t)[:, None] * tile_f + np.arange(slab_rows)[None, :]
    slab = chunks[:, gidx, :]                          # (N, num_t, slab_rows, hop)

    # VMEM budget (double-buffered blocks) with headroom.
    block_bytes = 4 * (k_pad * tile_b + slab_rows * n_hop + tile_f * tile_b)
    vmem_limit = int(min(96 * 2**20, max(32 * 2**20, 4 * block_bytes)))

    kernel = functools.partial(_stft_kernel, hop=n_hop, r_sub=R, tile_f=tile_f)

    out = pl.pallas_call(
        kernel,
        out_shape=jax.ShapeDtypeStruct((N, f_pad, bins_pad), jnp.float32),
        grid=(num_b, N, num_t),                        # bins tile outermost
        in_specs=[
            # hop-chunk slab for (row n, frame-tile t); leading dims squeezed
            pl.BlockSpec((None, None, slab_rows, n_hop), lambda b, n, t: (n, t, 0, 0)),
            # basis block depends only on the bins tile -> stays VMEM-resident
            pl.BlockSpec((k_pad, tile_b), lambda b, n, t: (0, b)),
        ],
        out_specs=pl.BlockSpec((None, tile_f, tile_b), lambda b, n, t: (n, t, b)),
        compiler_params=pltpu.CompilerParams(
            dimension_semantics=("parallel", "parallel", "parallel"),
            vmem_limit_bytes=vmem_limit,
        ),
    )(slab, basis)

    # --- glue: strip padding, split fused real|imag, one transpose ---
    out = out[:, :n_frames, :]                         # (N, F, bins_pad)
    real = out[..., :n_bins]
    imag = out[..., n_bins:two_bins]
    stft = jnp.stack([real, imag], axis=-1)            # (N, F, B, 2)
    stft = jnp.transpose(stft, (0, 2, 1, 3))           # (N, B, F, 2)
    return stft.reshape(nb_samples, nb_channels, n_bins, n_frames, 2)


def _reference_stft(x, window, n_fft, n_hop):
    """Pure-JAX reference using rfft (mirrors torch.stft, center=False)."""
    nb_samples, nb_channels, T = x.shape
    n_frames = 1 + (T - n_fft) // n_hop
    x_flat = x.reshape(-1, T)
    idx = (jnp.arange(n_frames) * n_hop)[:, None] + jnp.arange(n_fft)[None, :]
    frames = x_flat[:, idx] * window[None, None, :]    # (N, F, n_fft)
    spec = jnp.fft.rfft(frames, axis=-1)               # (N, F, bins)
    spec = jnp.transpose(spec, (0, 2, 1))              # (N, bins, F)
    out = jnp.stack([spec.real, spec.imag], axis=-1)
    return out.reshape(nb_samples, nb_channels, n_fft // 2 + 1, n_frames, 2)


if __name__ == "__main__":
    # Small shapes consistent with the STFT (scaled-down n_fft / hop).
    n_fft, n_hop = 32, 8
    nb_samples, nb_channels, nb_timesteps = 2, 2, 128

    key = jax.random.PRNGKey(0)
    x = jax.random.normal(
        key, (nb_samples, nb_channels, nb_timesteps), dtype=jnp.float32
    )

    # Hard-coded periodic hann window (== torch.hann_window default).
    n = np.arange(n_fft)
    hann = 0.5 - 0.5 * np.cos(2.0 * np.pi * n / n_fft)
    window = jnp.asarray(hann, dtype=jnp.float32)

    out = torch_stft_pallas(x, window, n_fft=n_fft, n_hop=n_hop)
    out = jax.block_until_ready(out)

    ref = _reference_stft(x, window, n_fft, n_hop)
    expected_shape = (nb_samples, nb_channels, n_fft // 2 + 1,
                      1 + (nb_timesteps - n_fft) // n_hop, 2)
    assert out.shape == expected_shape, out.shape
    np.testing.assert_allclose(np.asarray(out), np.asarray(ref),
                               rtol=1e-4, atol=1e-4)

    print("KERNEL_OK")
</pallas_src>

<mosaic_0001>
module attributes {stable_mosaic.version = 11 : i64} {
  func.func @_stft_kernel(%arg0: i32, %arg1: i32, %arg2: i32, %arg3: memref<1x1x19x8xf32, #tpu.memory_space<vmem>>, %arg4: memref<32x128xf32, #tpu.memory_space<vmem>>, %arg5: memref<1x16x128xf32, #tpu.memory_space<vmem>>) attributes {dimension_semantics = [#tpu.dimension_semantics<parallel>, #tpu.dimension_semantics<parallel>, #tpu.dimension_semantics<parallel>], iteration_bounds = array<i64: 1, 4, 1>, scalar_prefetch = 0 : i64, scratch_operands = 0 : i64, tpu.core_type = #tpu.core_type<tc>, window_params = [{transform_indices = @transform_0, window_bounds = array<i64: 1, 1, 19, 8>}, {transform_indices = @transform_1, window_bounds = array<i64: 32, 128>}, {transform_indices = @transform_2, window_bounds = array<i64: 1, 16, 128>}]} {
    %c0 = arith.constant 0 : index
    %c0_0 = arith.constant 0 : index
    %c0_1 = arith.constant 0 : index
    %c0_2 = arith.constant 0 : index
    %0 = vector.load %arg3[%c0, %c0_0, %c0_1, %c0_2] : memref<1x1x19x8xf32, #tpu.memory_space<vmem>>, vector<1x1x19x8xf32>
    %1 = vector.shape_cast %0 : vector<1x1x19x8xf32> to vector<19x8xf32>
    %2 = vector.extract_strided_slice %1 {offsets = [0, 0], sizes = [16, 8], strides = [1, 1]} : vector<19x8xf32> to vector<16x8xf32>
    %c0_3 = arith.constant 0 : index
    %c0_4 = arith.constant 0 : index
    %3 = vector.load %arg4[%c0_3, %c0_4] : memref<32x128xf32, #tpu.memory_space<vmem>>, vector<8x128xf32>
    %cst = arith.constant dense<0.000000e+00> : vector<16x128xf32>
    %4 = tpu.matmul %2, %3, %cst {dimension_numbers = #tpu.dot_dimension_numbers<[1], [0], [0], [1], [0, 0, 1, 1], [], []>} : vector<16x8xf32>, vector<8x128xf32>, vector<16x128xf32> -> vector<16x128xf32>
    %c0_5 = arith.constant 0 : index
    %c0_6 = arith.constant 0 : index
    %c0_7 = arith.constant 0 : index
    %5 = vector.load %arg5[%c0_5, %c0_6, %c0_7] : memref<1x16x128xf32, #tpu.memory_space<vmem>>, vector<1x16x128xf32>
    %6 = vector.shape_cast %5 : vector<1x16x128xf32> to vector<16x128xf32>
    %7 = vector.shape_cast %4 : vector<16x128xf32> to vector<1x16x128xf32>
    tpu.vector_store %arg5[%c0_5, %c0_6, %c0_7], %7 {strides = array<i32>} : memref<1x16x128xf32, #tpu.memory_space<vmem>>, vector<1x16x128xf32>,
    %8 = vector.extract_strided_slice %1 {offsets = [1, 0], sizes = [16, 8], strides = [1, 1]} : vector<19x8xf32> to vector<16x8xf32>
    %c8 = arith.constant 8 : index
    %c0_8 = arith.constant 0 : index
    %9 = vector.load %arg4[%c8, %c0_8] : memref<32x128xf32, #tpu.memory_space<vmem>>, vector<8x128xf32>
    %cst_9 = arith.constant dense<0.000000e+00> : vector<16x128xf32>
    %10 = tpu.matmul %8, %9, %cst_9 {dimension_numbers = #tpu.dot_dimension_numbers<[1], [0], [0], [1], [0, 0, 1, 1], [], []>} : vector<16x8xf32>, vector<8x128xf32>, vector<16x128xf32> -> vector<16x128xf32>
    %c0_10 = arith.constant 0 : index
    %c0_11 = arith.constant 0 : index
    %c0_12 = arith.constant 0 : index
    %11 = vector.load %arg5[%c0_10, %c0_11, %c0_12] : memref<1x16x128xf32, #tpu.memory_space<vmem>>, vector<1x16x128xf32>
    %12 = vector.shape_cast %11 : vector<1x16x128xf32> to vector<16x128xf32>
    %13 = arith.addf %12, %10 : vector<16x128xf32>
    %c0_13 = arith.constant 0 : index
    %c0_14 = arith.constant 0 : index
    %c0_15 = arith.constant 0 : index
    %14 = vector.load %arg5[%c0_13, %c0_14, %c0_15] : memref<1x16x128xf32, #tpu.memory_space<vmem>>, vector<1x16x128xf32>
    %15 = vector.shape_cast %14 : vector<1x16x128xf32> to vector<16x128xf32>
    %16 = vector.shape_cast %13 : vector<16x128xf32> to vector<1x16x128xf32>
    tpu.vector_store %arg5[%c0_13, %c0_14, %c0_15], %16 {strides = array<i32>} : memref<1x16x128xf32, #tpu.memory_space<vmem>>, vector<1x16x128xf32>,
    %17 = vector.extract_strided_slice %1 {offsets = [2, 0], sizes = [16, 8], strides = [1, 1]} : vector<19x8xf32> to vector<16x8xf32>
    %c16 = arith.constant 16 : index
    %c0_16 = arith.constant 0 : index
    %18 = vector.load %arg4[%c16, %c0_16] : memref<32x128xf32, #tpu.memory_space<vmem>>, vector<8x128xf32>
    %cst_17 = arith.constant dense<0.000000e+00> : vector<16x128xf32>
    %19 = tpu.matmul %17, %18, %cst_17 {dimension_numbers = #tpu.dot_dimension_numbers<[1], [0], [0], [1], [0, 0, 1, 1], [], []>} : vector<16x8xf32>, vector<8x128xf32>, vector<16x128xf32> -> vector<16x128xf32>
    %c0_18 = arith.constant 0 : index
    %c0_19 = arith.constant 0 : index
    %c0_20 = arith.constant 0 : index
    %20 = vector.load %arg5[%c0_18, %c0_19, %c0_20] : memref<1x16x128xf32, #tpu.memory_space<vmem>>, vector<1x16x128xf32>
    %21 = vector.shape_cast %20 : vector<1x16x128xf32> to vector<16x128xf32>
    %22 = arith.addf %21, %19 : vector<16x128xf32>
    %c0_21 = arith.constant 0 : index
    %c0_22 = arith.constant 0 : index
    %c0_23 = arith.constant 0 : index
    %23 = vector.load %arg5[%c0_21, %c0_22, %c0_23] : memref<1x16x128xf32, #tpu.memory_space<vmem>>, vector<1x16x128xf32>
    %24 = vector.shape_cast %23 : vector<1x16x128xf32> to vector<16x128xf32>
    %25 = vector.shape_cast %22 : vector<16x128xf32> to vector<1x16x128xf32>
    tpu.vector_store %arg5[%c0_21, %c0_22, %c0_23], %25 {strides = array<i32>} : memref<1x16x128xf32, #tpu.memory_space<vmem>>, vector<1x16x128xf32>,
    %26 = vector.extract_strided_slice %1 {offsets = [3, 0], sizes = [16, 8], strides = [1, 1]} : vector<19x8xf32> to vector<16x8xf32>
    %c24 = arith.constant 24 : index
    %c0_24 = arith.constant 0 : index
    %27 = vector.load %arg4[%c24, %c0_24] : memref<32x128xf32, #tpu.memory_space<vmem>>, vector<8x128xf32>
    %cst_25 = arith.constant dense<0.000000e+00> : vector<16x128xf32>
    %28 = tpu.matmul %26, %27, %cst_25 {dimension_numbers = #tpu.dot_dimension_numbers<[1], [0], [0], [1], [0, 0, 1, 1], [], []>} : vector<16x8xf32>, vector<8x128xf32>, vector<16x128xf32> -> vector<16x128xf32>
    %c0_26 = arith.constant 0 : index
    %c0_27 = arith.constant 0 : index
    %c0_28 = arith.constant 0 : index
    %29 = vector.load %arg5[%c0_26, %c0_27, %c0_28] : memref<1x16x128xf32, #tpu.memory_space<vmem>>, vector<1x16x128xf32>
    %30 = vector.shape_cast %29 : vector<1x16x128xf32> to vector<16x128xf32>
    %31 = arith.addf %30, %28 : vector<16x128xf32>
    %c0_29 = arith.constant 0 : index
    %c0_30 = arith.constant 0 : index
    %c0_31 = arith.constant 0 : index
    %32 = vector.load %arg5[%c0_29, %c0_30, %c0_31] : memref<1x16x128xf32, #tpu.memory_space<vmem>>, vector<1x16x128xf32>
    %33 = vector.shape_cast %32 : vector<1x16x128xf32> to vector<16x128xf32>
    %34 = vector.shape_cast %31 : vector<16x128xf32> to vector<1x16x128xf32>
    tpu.vector_store %arg5[%c0_29, %c0_30, %c0_31], %34 {strides = array<i32>} : memref<1x16x128xf32, #tpu.memory_space<vmem>>, vector<1x16x128xf32>,
    return
  }
  func.func @transform_0(%arg0: i32, %arg1: i32, %arg2: i32) -> (i32, i32, i32, i32) {
    %c0_i32 = arith.constant 0 : i32
    %c0_i32_0 = arith.constant 0 : i32
    %c0_i32_1 = arith.constant 0 : i32
    return %arg1, %arg2, %c0_i32, %c0_i32_0 : i32, i32, i32, i32
  }
  func.func @transform_1(%arg0: i32, %arg1: i32, %arg2: i32) -> (i32, i32) {
    %c0_i32 = arith.constant 0 : i32
    %c0_i32_0 = arith.constant 0 : i32
    return %c0_i32, %arg0 : i32, i32
  }
  func.func @transform_2(%arg0: i32, %arg1: i32, %arg2: i32) -> (i32, i32, i32) {
    %c0_i32 = arith.constant 0 : i32
    return %arg1, %arg2, %arg0 : i32, i32, i32
  }
}

</mosaic_0001>

<bundles_post_ra>
// kernel: torch_stft_pallas.1
= control target key start
LH: loop header
LB: loop body
LE: loop exit
PB: predicated region body
PF: predicated region fallthrough
CT: control target
= control target key end

     0   :  { %s822_s9 = smov 0   ;;  %s824_s10 = smov 0   ;;  %s885_s0 = inlined_call_operand.vmem [shape: f32[4,1,19,8], index: 0, kind: input, shape index: {}]   ;;  %s886_s1 = inlined_call_operand.vmem [shape: f32[32,128], index: 1, kind: input, shape index: {}]   ;;  %s887_s2 = inlined_call_operand.vmem [shape: f32[4,16,128], index: 2, kind: output, shape index: {}]  }
   0x1   :  { %s826_s11 = smov 0  }
   0x2 LB: > { %s27_s12 = sadd.s32 1, %s801_s10  ;;  %p701_p0 = scmp.ge.s32.totalorder %s805_s11, 1  ;;  %s805_s11 = sphi %s826_s11, %s12_s11   ;;  %s801_s10 = sphi %s824_s10, %s889_s10   ;;  %s797_s9 = sphi %s822_s9, %s888_s9  }
   0x3   : > { %p29_p1 = scmp.ge.s32.totalorder %s27_s12, 4  ;;  %p150_p2 = scmp.lt.s32.totalorder %s805_s11, 5 }
   0x5   : > { %s891_s12 = smov (%p29_p1, %s27_s12), 0  ;;  %p151_p3 = pnand %p701_p0, %p150_p2 }
   0x6   : > { %v216_v0 = vld [vmem:[%s886_s1] sm:$0xff] (!%p151_p3)  ;;  %p187_p4 = scmp.lt.s32.totalorder (!%p151_p3), %s797_s9, 3  ;;  %v301_v1 = vld [vmem:[%s886_s1 + $0x8] sm:$0xff] (!%p151_p3)  ;;  %v394_v2 = vld [vmem:[%s886_s1 + $0x10] sm:$0xff] (!%p151_p3)  ;;  %vm217_vm0 = vcmask (!%p151_p3), 64512   ;;  %vm395_vm1 = vcmask (!%p151_p3), 1045504  }
   0x7   : > { %154 = sbr.rel (%p151_p3) target bundleno = 248 (0xf8), region = 28  ;;  %728 = vmatprep.subr.mxu1 (!%p151_p3), %v216_v0  ;;  %738 = vmatprep.subr.mxu0 (!%p151_p3), %v394_v2  ;;  %v486_v3 = vld [vmem:[%s886_s1 + $0x18] sm:$0xff] (!%p151_p3)  ;;  %vm303_vm2 = vcmask (!%p151_p3), 1046528   ;;  %vm487_vm3 = vcmask (!%p151_p3), 1044480  }
   0x8   : > { %729 = vmatpush3.msra.mxu1 (!%p151_p3), %v216_v0  ;;  %739 = vmatpush3.msra.mxu0 (!%p151_p3), %v394_v2 }
   0x9   : > { %733 = vmatprep.subr.mxu1 (!%p151_p3), %v301_v1  ;;  %743 = vmatprep.subr.mxu0 (!%p151_p3), %v486_v3 }
   0xe   : > { %s893_s9 = smov (!%p187_p4, %s797_s9), 3 }
   0xf   : > { %s758_s21 = smul.u32 24, %s893_s9  ;;  %s715_s25 = sshll.u32 %s893_s9, 4 }
  0x10   : > { %s211_s28 = scalar_lea.vmem %s887_s2, %s715_s25 }
  0x11   : > { %s195_s24 = scalar_lea.vmem %s885_s0, %s758_s21 }
  0x12   : > { %v213_v4 = vld [vmem:[%s195_s24] sm:$0xff]  ;;  %v215_v5 = vld [vmem:[%s195_s24 + $0x10] sm:$0x7]  ;;  %v214_v6 = vld [vmem:[%s195_s24 + $0x8] sm:$0xff] }
  0x13   : > { %730 = vmatprep.mubr.msk.f32.mxu1 %vm217_vm0, %v213_v4  ;;  %v304_v7 = vrot.slane %v213_v4, 1  ;;  %v488_v8 = vrot.slane %v213_v4, 3  ;;  %v305_v9 = vrot.slane %v214_v6, 1  ;;  %v489_v10 = vrot.slane %v214_v6, 3 }
  0x14   : > { %731 = vmatmul.mubr.msk.f32.vlgmr.msra.gmra.mrb[0].mxu1 %vm217_vm0, %v214_v6  ;;  %v396_v11 = vrot.slane %v213_v4, 2  ;;  %v397_v12 = vrot.slane %v214_v6, 2  ;;  %v399_v13 = vrot.slane %v215_v5, 2  ;;  %v307_v15 = vrot.slane %v215_v5, 1 }
  0x15   : > { %734 = vmatpush3.msra.mxu1 %v301_v1  ;;  %v306_v14 = vsel %vm303_vm2, %v304_v7, %v305_v9  ;;  %v490_v18 = vsel %vm487_vm3, %v488_v8, %v489_v10  ;;  %v491_v20 = vrot.slane %v215_v5, 3 }
  0x16   : > { %v398_v16 = vsel %vm395_vm1, %v396_v11, %v397_v12  ;;  %v400_v17 = vsel %vm395_vm1, %v397_v12, %v399_v13  ;;  %735 = vmatprep.mubr.msk.f32.mxu1 %vm217_vm0, %v306_v14  ;;  %v308_v19 = vsel %vm303_vm2, %v305_v9, %v307_v15 }
  0x17   : > { %740 = vmatprep.mubr.msk.f32.mxu0 %vm217_vm0, %v398_v16  ;;  %v492_v21 = vsel %vm487_vm3, %v489_v10, %v491_v20 }
  0x18   : > { %741 = vmatmul.mubr.msk.f32.vlgmr.msra.gmra.mrb[0].mxu0 %vm217_vm0, %v400_v17 }
  0x19   : > { %744 = vmatpush3.msra.mxu0 %v486_v3  ;;  %745 = vmatprep.mubr.msk.f32.mxu0 %vm217_vm0, %v490_v18 }
  0x1c   : > { %736 = vmatmul.mubr.msk.f32.vlgmr.msra.gmra.mrb[0].mxu1 %vm217_vm0, %v308_v19 }
  0x20   : > { %746 = vmatmul.mubr.msk.f32.vlgmr.msra.gmra.mrb[0].mxu0 %vm217_vm0, %v492_v21 }
  0xef   : > { %v737_v22 = vpop.f32.mrb[0].mxu1 }
  0xf0   : > { %v379_v23 = vpop.f32.mrb[1].mxu1 }
  0xf3   : > { %v747_v24 = vpop.f32.mrb[0].mxu0 }
  0xf4   : > { %v750_v25 = vadd.f32 %v747_v24, %v737_v22  ;;  %v563_v26 = vpop.f32.mrb[1].mxu0 }
  0xf5   : > { %v753_v27 = vadd.f32 %v563_v26, %v379_v23 }
  0xf6   : > { %577 = vst [vmem:[%s211_s28 + $0x8] sm:$0xff] %v750_v25 }
  0xf7   : > { %576 = vst [vmem:[%s211_s28] sm:$0xff] %v753_v27 }
  0xf8 PF: > { %s12_s11 = sadd.s32 1, %s805_s11   ;;  %s888_s9 = smov %s801_s10 }
  0xf9   : > { %p9_p5 = scmp.ge.s32.totalorder %s12_s11, 6   ;;  %s889_s10 = smov %s891_s12 }
  0xfb   :  { %11 = sbr.rel (!%p9_p5) target bundleno = 2 (0x2), region = 61 }

</bundles_post_ra>
